<compile_context>
chip_gen: v7x
topology: tpu7x:2x2x1
jax: 0.10.0
libtpu: 0.0.40
codegen_flags: <defaults>
</compile_context>

<pallas_src>
import math
import functools

import jax
import jax.numpy as jnp
from jax.experimental import pallas as pl
from jax.experimental.pallas import tpu as pltpu


_VMEM_LIMIT_BYTES = 32 * 1024 * 1024  # safe on v5e (128 MiB phys) / v6e / v7x (64 MiB phys)


# ------------------------------- kernels --------------------------------------


def _noisy_linear_train_kernel(x_ref, wmu_ref, wsig_ref, eps_in_ref,
                               eps_out_ref, b_ref, o_ref,
                               acc_mu_ref, acc_sig_ref):
    """One (tm, tn) output tile accumulated over the K grid axis (training path).

    x_ref:       (tm, tk)  f32 activations
    wmu_ref:     (tk, tn)  bf16 weight_mu transposed
    wsig_ref:    (tk, tn)  bf16 weight_sigma transposed
    eps_in_ref:  (1,  tk)  f32 factorized input noise
    eps_out_ref: (1,  tn)  f32 factorized output noise
    b_ref:       (1,  tn)  f32 precombined noisy bias (mu + sigma*eps)
    o_ref:       (tm, tn)  output (x.dtype)
    acc_mu_ref / acc_sig_ref: (tm, tn) f32 scratch accumulators
    """
    k = pl.program_id(2)

    @pl.when(k == 0)
    def _init():
        acc_mu_ref[...] = jnp.zeros_like(acc_mu_ref)
        acc_sig_ref[...] = jnp.zeros_like(acc_sig_ref)

    x = x_ref[...]                                       # (tm, tk) f32
    xb = x.astype(jnp.bfloat16)
    xn = (x * eps_in_ref[...]).astype(jnp.bfloat16)      # bcast (1, tk)

    acc_mu_ref[...] += jnp.dot(xb, wmu_ref[...],
                               preferred_element_type=jnp.float32)
    acc_sig_ref[...] += jnp.dot(xn, wsig_ref[...],
                                preferred_element_type=jnp.float32)

    @pl.when(k == pl.num_programs(2) - 1)
    def _finalize():
        # eps_out applied once here instead of once per K step.
        o_ref[...] = (acc_mu_ref[...]
                      + eps_out_ref[...] * acc_sig_ref[...]
                      + b_ref[...]).astype(o_ref.dtype)


def _linear_eval_kernel(x_ref, wmu_ref, b_ref, o_ref, acc_ref):
    """Eval path: plain linear with mu weights and mu bias only."""
    k = pl.program_id(2)

    @pl.when(k == 0)
    def _init():
        acc_ref[...] = jnp.zeros_like(acc_ref)

    acc_ref[...] += jnp.dot(x_ref[...].astype(jnp.bfloat16), wmu_ref[...],
                            preferred_element_type=jnp.float32)

    @pl.when(k == pl.num_programs(2) - 1)
    def _finalize():
        o_ref[...] = (acc_ref[...] + b_ref[...]).astype(o_ref.dtype)


# ------------------------------ tiling helpers ---------------------------------


def _round_up(v, m):
    return (v + m - 1) // m * m


def _pad2(a, rows, cols):
    r, c = a.shape
    if r == rows and c == cols:
        return a
    return jnp.pad(a, ((0, rows - r), (0, cols - c)))


def _pad1(a, n):
    if a.shape[0] == n:
        return a
    return jnp.pad(a, (0, n - a.shape[0]))


def _pick_tile(dim, target, align):
    """Largest multiple of `align` that divides `dim` and is <= target.

    `dim` must already be a multiple of `align` (guaranteed by the padding
    done in pack_params / the forward).  Avoids rounding dims up to tile
    multiples (no pure-padding DMA/MXU work).
    """
    target = max(align, min(target, dim))
    best = align
    t = align
    while t <= target:
        if dim % t == 0:
            best = t
        t += align
    return best


def _tiling(batch, K, N, tm, tn, tk):
    M = _round_up(batch, 8)
    tm_ = _pick_tile(M, tm, 8)
    tk_ = _pick_tile(K, tk, 128)
    tn_target = tn
    # v7x has 2 TensorCores: if the M axis is a single tile, make sure the N
    # ("parallel") axis has at least 2 tiles so both cores get work.
    if (M // tm_) == 1 and N >= 2 * 128:
        tn_target = min(tn_target, N // 2)
    tn_ = _pick_tile(N, tn_target, 128)
    grid = (M // tm_, N // tn_, K // tk_)
    return M, tm_, tn_, tk_, grid


# ------------------------------- forwards --------------------------------------


@functools.partial(jax.jit, static_argnames=("out_features", "tm", "tn", "tk"))
def _noisy_forward_train(x, wmu, wsig, eps_in, eps_out, bias, *,
                         out_features, tm, tn, tk):
    batch, in_f = x.shape
    K, N = wmu.shape                         # already (8,128)-aligned, bf16
    M, tm_, tn_, tk_, grid = _tiling(batch, K, N, tm, tn, tk)

    # Only x is padded per call (cheap: batch x in); weight padding was hoisted
    # into pack_params.  Zero padding contributes nothing to the contraction.
    xp = x if (M == batch and K == in_f) else jnp.pad(
        x, ((0, M - batch), (0, K - in_f)))

    x_spec = pl.BlockSpec((tm_, tk_), lambda i, j, k: (i, k))
    w_spec = pl.BlockSpec((tk_, tn_), lambda i, j, k: (k, j))
    row_k_spec = pl.BlockSpec((1, tk_), lambda i, j, k: (0, k))
    row_n_spec = pl.BlockSpec((1, tn_), lambda i, j, k: (0, j))
    out_spec = pl.BlockSpec((tm_, tn_), lambda i, j, k: (i, j))

    out = pl.pallas_call(
        _noisy_linear_train_kernel,
        out_shape=jax.ShapeDtypeStruct((M, N), x.dtype),
        grid_spec=pltpu.PrefetchScalarGridSpec(
            num_scalar_prefetch=0,
            grid=grid,
            in_specs=[x_spec, w_spec, w_spec, row_k_spec, row_n_spec, row_n_spec],
            out_specs=out_spec,
            scratch_shapes=[pltpu.VMEM((tm_, tn_), jnp.float32),
                            pltpu.VMEM((tm_, tn_), jnp.float32)],
        ),
        compiler_params=pltpu.CompilerParams(
            dimension_semantics=("parallel", "parallel", "arbitrary"),
            vmem_limit_bytes=_VMEM_LIMIT_BYTES),
    )(xp, wmu, wsig, eps_in, eps_out, bias)

    return out[:batch, :out_features]


@functools.partial(jax.jit, static_argnames=("out_features", "tm", "tn", "tk"))
def _linear_forward_eval(x, wmu, bias_mu, *, out_features, tm, tn, tk):
    batch, in_f = x.shape
    K, N = wmu.shape
    M, tm_, tn_, tk_, grid = _tiling(batch, K, N, tm, tn, tk)

    xp = x if (M == batch and K == in_f) else jnp.pad(
        x, ((0, M - batch), (0, K - in_f)))

    x_spec = pl.BlockSpec((tm_, tk_), lambda i, j, k: (i, k))
    w_spec = pl.BlockSpec((tk_, tn_), lambda i, j, k: (k, j))
    row_n_spec = pl.BlockSpec((1, tn_), lambda i, j, k: (0, j))
    out_spec = pl.BlockSpec((tm_, tn_), lambda i, j, k: (i, j))

    out = pl.pallas_call(
        _linear_eval_kernel,
        out_shape=jax.ShapeDtypeStruct((M, N), x.dtype),
        grid_spec=pltpu.PrefetchScalarGridSpec(
            num_scalar_prefetch=0,
            grid=grid,
            in_specs=[x_spec, w_spec, row_n_spec],
            out_specs=out_spec,
            scratch_shapes=[pltpu.VMEM((tm_, tn_), jnp.float32)],
        ),
        compiler_params=pltpu.CompilerParams(
            dimension_semantics=("parallel", "parallel", "arbitrary"),
            vmem_limit_bytes=_VMEM_LIMIT_BYTES),
    )(xp, wmu, bias_mu)

    return out[:batch, :out_features]


def noisy_linear_forward(x, packed, *, training=True, tm=256, tn=512, tk=1024):
    """NoisyLinear forward from pack_params() output.

    NOTE: only equivalent to the PyTorch module when weight_epsilon is the
    factorized outer(eps_out, eps_in) produced by reset_noise() (which is how
    the module always constructs it).
    """
    if training:
        return _noisy_forward_train(
            x, packed["wmu"], packed["wsig"], packed["eps_in"],
            packed["eps_out"], packed["bias_noisy"],
            out_features=packed["out_features"], tm=tm, tn=tn, tk=tk)
    return _linear_forward_eval(
        x, packed["wmu"], packed["bias_mu"],
        out_features=packed["out_features"], tm=tm, tn=tn, tk=tk)


# ----------------------- parameters / noise / packing --------------------------


def _scale_noise(key, size):
    v = jax.random.normal(key, (size,), dtype=jnp.float32)
    return jnp.sign(v) * jnp.sqrt(jnp.abs(v))


def init_noisy_linear(key, in_features, out_features, std_init=0.4):
    """reset_parameters(): f32 master params, weights stored transposed (in, out)."""
    k_wmu, k_bmu = jax.random.split(key, 2)
    mu_range = 1.0 / math.sqrt(in_features)
    weight_mu_t = jax.random.uniform(k_wmu, (in_features, out_features),
                                     jnp.float32, -mu_range, mu_range)
    weight_sigma_t = jnp.full((in_features, out_features),
                              std_init / math.sqrt(in_features), jnp.float32)
    bias_mu = jax.random.uniform(k_bmu, (out_features,),
                                 jnp.float32, -mu_range, mu_range)
    bias_sigma = jnp.full((out_features,),
                          std_init / math.sqrt(out_features), jnp.float32)
    return dict(weight_mu_t=weight_mu_t, weight_sigma_t=weight_sigma_t,
                bias_mu=bias_mu, bias_sigma=bias_sigma)


def sample_noise(key, in_features, out_features):
    """reset_noise(): factorized noise vectors (outer product never materialized)."""
    k_in, k_out, k_b = jax.random.split(key, 3)
    return dict(eps_in=_scale_noise(k_in, in_features),
                eps_out=_scale_noise(k_out, out_features),
                bias_epsilon=_scale_noise(k_b, out_features))


def pack_params(params, noise):
    """One-time (per reset_noise) packing for the kernel.

    All weight-sized work lives here, NOT in the jitted forward:
      * pad in/out dims to multiples of 128 (zero padding),
      * cast both weight streams to bf16,
      * precombine the noisy bias (O(out) work).
    """
    in_f, out_f = params["weight_mu_t"].shape
    K = _round_up(in_f, 128)
    N = _round_up(out_f, 128)

    wmu = _pad2(params["weight_mu_t"], K, N).astype(jnp.bfloat16)
    wsig = _pad2(params["weight_sigma_t"], K, N).astype(jnp.bfloat16)
    eps_in = _pad1(noise["eps_in"], K).reshape(1, K).astype(jnp.float32)
    eps_out = _pad1(noise["eps_out"], N).reshape(1, N).astype(jnp.float32)
    bias_noisy = _pad1(params["bias_mu"]
                       + params["bias_sigma"] * noise["bias_epsilon"],
                       N).reshape(1, N).astype(jnp.float32)
    bias_mu = _pad1(params["bias_mu"], N).reshape(1, N).astype(jnp.float32)

    return dict(wmu=wmu, wsig=wsig, eps_in=eps_in, eps_out=eps_out,
                bias_noisy=bias_noisy, bias_mu=bias_mu, out_features=out_f)


# ----------------------------------- demo --------------------------------------


if __name__ == "__main__":
    key = jax.random.PRNGKey(0)
    hp = jax.lax.Precision.HIGHEST

    configs = [
        # (batch, in_features, out_features, tile overrides)
        (8, 32, 64, dict()),                           # single-tile, padded to 128
        (16, 256, 384, dict(tm=8, tn=128, tk=128)),    # multi-tile grid (2,3,2)
    ]

    for batch, in_f, out_f, tiles in configs:
        key, k_p, k_n, k_x = jax.random.split(key, 4)
        p = init_noisy_linear(k_p, in_f, out_f, std_init=0.4)
        nz = sample_noise(k_n, in_f, out_f)
        packed = pack_params(p, nz)
        x = jax.random.normal(k_x, (batch, in_f), dtype=jnp.float32)

        y_train = jax.block_until_ready(
            noisy_linear_forward(x, packed, training=True, **tiles))
        y_eval = jax.block_until_ready(
            noisy_linear_forward(x, packed, training=False, **tiles))

        assert y_train.shape == (batch, out_f)
        assert y_eval.shape == (batch, out_f)

        # Tight reference using the same bf16-rounded operands as the kernel.
        wmu_b = p["weight_mu_t"].astype(jnp.bfloat16).astype(jnp.float32)
        wsig_b = p["weight_sigma_t"].astype(jnp.bfloat16).astype(jnp.float32)
        xb = x.astype(jnp.bfloat16).astype(jnp.float32)
        xnb = (x * nz["eps_in"][None, :]).astype(jnp.bfloat16).astype(jnp.float32)
        bias_noisy = p["bias_mu"] + p["bias_sigma"] * nz["bias_epsilon"]

        y_train_ref = (jnp.dot(xb, wmu_b, precision=hp)
                       + nz["eps_out"][None, :] * jnp.dot(xnb, wsig_b, precision=hp)
                       + bias_noisy[None, :])
        y_eval_ref = jnp.dot(xb, wmu_b, precision=hp) + p["bias_mu"][None, :]

        assert jnp.allclose(y_train, y_train_ref, atol=1e-3, rtol=1e-3)
        assert jnp.allclose(y_eval, y_eval_ref, atol=1e-3, rtol=1e-3)

        # Loose check against the exact PyTorch f32 semantics (bf16 weight storage
        # introduces a small, bounded deviation).
        w_t_f32 = (p["weight_mu_t"]
                   + p["weight_sigma_t"] * jnp.outer(nz["eps_in"], nz["eps_out"]))
        y_train_f32 = jnp.dot(x, w_t_f32, precision=hp) + bias_noisy[None, :]
        y_eval_f32 = jnp.dot(x, p["weight_mu_t"], precision=hp) + p["bias_mu"][None, :]
        assert jnp.allclose(y_train, y_train_f32, atol=5e-2, rtol=5e-2)
        assert jnp.allclose(y_eval, y_eval_f32, atol=5e-2, rtol=5e-2)

    print("KERNEL_OK")
</pallas_src>

<mosaic_0001>
module attributes {stable_mosaic.version = 11 : i64} {
  func.func @_noisy_linear_train_kernel(%arg0: i32, %arg1: i32, %arg2: i32, %arg3: memref<8x128xf32, #tpu.memory_space<vmem>>, %arg4: memref<128x128xbf16, #tpu.memory_space<vmem>>, %arg5: memref<128x128xbf16, #tpu.memory_space<vmem>>, %arg6: memref<1x128xf32, #tpu.memory_space<vmem>>, %arg7: memref<1x128xf32, #tpu.memory_space<vmem>>, %arg8: memref<1x128xf32, #tpu.memory_space<vmem>>, %arg9: memref<8x128xf32, #tpu.memory_space<vmem>>, %arg10: memref<8x128xf32, #tpu.memory_space<vmem>>, %arg11: memref<8x128xf32, #tpu.memory_space<vmem>>) attributes {dimension_semantics = [#tpu.dimension_semantics<parallel>, #tpu.dimension_semantics<parallel>, #tpu.dimension_semantics<arbitrary>], iteration_bounds = array<i64: 1, 1, 1>, scalar_prefetch = 0 : i64, scratch_operands = 2 : i64, tpu.core_type = #tpu.core_type<tc>, window_params = [{transform_indices = @transform_0, window_bounds = array<i64: 8, 128>}, {transform_indices = @transform_1, window_bounds = array<i64: 128, 128>}, {transform_indices = @transform_2, window_bounds = array<i64: 128, 128>}, {transform_indices = @transform_3, window_bounds = array<i64: 1, 128>}, {transform_indices = @transform_4, window_bounds = array<i64: 1, 128>}, {transform_indices = @transform_5, window_bounds = array<i64: 1, 128>}, {transform_indices = @transform_6, window_bounds = array<i64: 8, 128>}]} {
    %c0_i32 = arith.constant 0 : i32
    %0 = arith.cmpi eq, %arg2, %c0_i32 : i32
    %1 = arith.extui %0 : i1 to i32
    %c0_i32_0 = arith.constant 0 : i32
    %2 = arith.cmpi ne, %1, %c0_i32_0 : i32
    scf.if %2 {
      %cst_19 = arith.constant 0.000000e+00 : f32
      %22 = vector.broadcast %cst_19 : f32 to vector<8x128xf32>
      %c0_20 = arith.constant 0 : index
      %c0_21 = arith.constant 0 : index
      %23 = vector.load %arg10[%c0_20, %c0_21] : memref<8x128xf32, #tpu.memory_space<vmem>>, vector<8x128xf32>
      tpu.vector_store %arg10[%c0_20, %c0_21], %22 {strides = array<i32>} : memref<8x128xf32, #tpu.memory_space<vmem>>, vector<8x128xf32>,
      %cst_22 = arith.constant 0.000000e+00 : f32
      %24 = vector.broadcast %cst_22 : f32 to vector<8x128xf32>
      %c0_23 = arith.constant 0 : index
      %c0_24 = arith.constant 0 : index
      %25 = vector.load %arg11[%c0_23, %c0_24] : memref<8x128xf32, #tpu.memory_space<vmem>>, vector<8x128xf32>
      tpu.vector_store %arg11[%c0_23, %c0_24], %24 {strides = array<i32>} : memref<8x128xf32, #tpu.memory_space<vmem>>, vector<8x128xf32>,
    } else {
    }
    %c0 = arith.constant 0 : index
    %c0_1 = arith.constant 0 : index
    %3 = vector.load %arg3[%c0, %c0_1] : memref<8x128xf32, #tpu.memory_space<vmem>>, vector<8x128xf32>
    %4 = arith.truncf %3 : vector<8x128xf32> to vector<8x128xbf16>
    %c0_2 = arith.constant 0 : index
    %c0_3 = arith.constant 0 : index
    %5 = vector.load %arg6[%c0_2, %c0_3] : memref<1x128xf32, #tpu.memory_space<vmem>>, vector<1x128xf32>
    %6 = vector.broadcast %5 : vector<1x128xf32> to vector<8x128xf32>
    %7 = arith.mulf %3, %6 : vector<8x128xf32>
    %8 = arith.truncf %7 : vector<8x128xf32> to vector<8x128xbf16>
    %c0_4 = arith.constant 0 : index
    %c0_5 = arith.constant 0 : index
    %9 = vector.load %arg10[%c0_4, %c0_5] : memref<8x128xf32, #tpu.memory_space<vmem>>, vector<8x128xf32>
    %c0_6 = arith.constant 0 : index
    %c0_7 = arith.constant 0 : index
    %10 = vector.load %arg4[%c0_6, %c0_7] : memref<128x128xbf16, #tpu.memory_space<vmem>>, vector<128x128xbf16>
    %cst = arith.constant dense<0.000000e+00> : vector<8x128xf32>
    %11 = tpu.matmul %4, %10, %cst {dimension_numbers = #tpu.dot_dimension_numbers<[1], [0], [0], [1], [0, 0, 1, 1], [], []>} : vector<8x128xbf16>, vector<128x128xbf16>, vector<8x128xf32> -> vector<8x128xf32>
    %12 = arith.addf %9, %11 : vector<8x128xf32>
    %c0_8 = arith.constant 0 : index
    %c0_9 = arith.constant 0 : index
    %13 = vector.load %arg10[%c0_8, %c0_9] : memref<8x128xf32, #tpu.memory_space<vmem>>, vector<8x128xf32>
    tpu.vector_store %arg10[%c0_8, %c0_9], %12 {strides = array<i32>} : memref<8x128xf32, #tpu.memory_space<vmem>>, vector<8x128xf32>,
    %c0_10 = arith.constant 0 : index
    %c0_11 = arith.constant 0 : index
    %14 = vector.load %arg11[%c0_10, %c0_11] : memref<8x128xf32, #tpu.memory_space<vmem>>, vector<8x128xf32>
    %c0_12 = arith.constant 0 : index
    %c0_13 = arith.constant 0 : index
    %15 = vector.load %arg5[%c0_12, %c0_13] : memref<128x128xbf16, #tpu.memory_space<vmem>>, vector<128x128xbf16>
    %cst_14 = arith.constant dense<0.000000e+00> : vector<8x128xf32>
    %16 = tpu.matmul %8, %15, %cst_14 {dimension_numbers = #tpu.dot_dimension_numbers<[1], [0], [0], [1], [0, 0, 1, 1], [], []>} : vector<8x128xbf16>, vector<128x128xbf16>, vector<8x128xf32> -> vector<8x128xf32>
    %17 = arith.addf %14, %16 : vector<8x128xf32>
    %c0_15 = arith.constant 0 : index
    %c0_16 = arith.constant 0 : index
    %18 = vector.load %arg11[%c0_15, %c0_16] : memref<8x128xf32, #tpu.memory_space<vmem>>, vector<8x128xf32>
    tpu.vector_store %arg11[%c0_15, %c0_16], %17 {strides = array<i32>} : memref<8x128xf32, #tpu.memory_space<vmem>>, vector<8x128xf32>,
    %c0_i32_17 = arith.constant 0 : i32
    %19 = arith.cmpi eq, %arg2, %c0_i32_17 : i32
    %20 = arith.extui %19 : i1 to i32
    %c0_i32_18 = arith.constant 0 : i32
    %21 = arith.cmpi ne, %20, %c0_i32_18 : i32
    scf.if %21 {
      %c0_19 = arith.constant 0 : index
      %c0_20 = arith.constant 0 : index
      %22 = vector.load %arg10[%c0_19, %c0_20] : memref<8x128xf32, #tpu.memory_space<vmem>>, vector<8x128xf32>
      %c0_21 = arith.constant 0 : index
      %c0_22 = arith.constant 0 : index
      %23 = vector.load %arg7[%c0_21, %c0_22] : memref<1x128xf32, #tpu.memory_space<vmem>>, vector<1x128xf32>
      %c0_23 = arith.constant 0 : index
      %c0_24 = arith.constant 0 : index
      %24 = vector.load %arg11[%c0_23, %c0_24] : memref<8x128xf32, #tpu.memory_space<vmem>>, vector<8x128xf32>
      %25 = vector.broadcast %23 : vector<1x128xf32> to vector<8x128xf32>
      %26 = arith.mulf %25, %24 : vector<8x128xf32>
      %27 = arith.addf %22, %26 : vector<8x128xf32>
      %c0_25 = arith.constant 0 : index
      %c0_26 = arith.constant 0 : index
      %28 = vector.load %arg8[%c0_25, %c0_26] : memref<1x128xf32, #tpu.memory_space<vmem>>, vector<1x128xf32>
      %29 = vector.broadcast %28 : vector<1x128xf32> to vector<8x128xf32>
      %30 = arith.addf %27, %29 : vector<8x128xf32>
      %c0_27 = arith.constant 0 : index
      %c0_28 = arith.constant 0 : index
      %31 = vector.load %arg9[%c0_27, %c0_28] : memref<8x128xf32, #tpu.memory_space<vmem>>, vector<8x128xf32>
      tpu.vector_store %arg9[%c0_27, %c0_28], %30 {strides = array<i32>} : memref<8x128xf32, #tpu.memory_space<vmem>>, vector<8x128xf32>,
    } else {
    }
    return
  }
  func.func @transform_0(%arg0: i32, %arg1: i32, %arg2: i32) -> (i32, i32) {
    %c0_i32 = arith.constant 0 : i32
    return %arg0, %arg2 : i32, i32
  }
  func.func @transform_1(%arg0: i32, %arg1: i32, %arg2: i32) -> (i32, i32) {
    %c0_i32 = arith.constant 0 : i32
    return %arg2, %arg1 : i32, i32
  }
  func.func @transform_2(%arg0: i32, %arg1: i32, %arg2: i32) -> (i32, i32) {
    %c0_i32 = arith.constant 0 : i32
    return %arg2, %arg1 : i32, i32
  }
  func.func @transform_3(%arg0: i32, %arg1: i32, %arg2: i32) -> (i32, i32) {
    %c0_i32 = arith.constant 0 : i32
    %c0_i32_0 = arith.constant 0 : i32
    return %c0_i32, %arg2 : i32, i32
  }
  func.func @transform_4(%arg0: i32, %arg1: i32, %arg2: i32) -> (i32, i32) {
    %c0_i32 = arith.constant 0 : i32
    %c0_i32_0 = arith.constant 0 : i32
    return %c0_i32, %arg1 : i32, i32
  }
  func.func @transform_5(%arg0: i32, %arg1: i32, %arg2: i32) -> (i32, i32) {
    %c0_i32 = arith.constant 0 : i32
    %c0_i32_0 = arith.constant 0 : i32
    return %c0_i32, %arg1 : i32, i32
  }
  func.func @transform_6(%arg0: i32, %arg1: i32, %arg2: i32) -> (i32, i32) {
    %c0_i32 = arith.constant 0 : i32
    return %arg0, %arg1 : i32, i32
  }
}

</mosaic_0001>

<bundles_post_ra>
// kernel: _noisy_forward_train.1
= control target key start
LH: loop header
LB: loop body
LE: loop exit
PB: predicated region body
PF: predicated region fallthrough
CT: control target
= control target key end

     0   :  { %11 = vsyncpa [#allocation5], 0  ;;  %s585_s0 = inlined_call_operand.vmem [shape: f32[8,128], index: 0, kind: input, shape index: {}]   ;;  %s586_s1 = inlined_call_operand.hbm [shape: bf16[128,128], index: 1, kind: input, shape index: {}]   ;;  %s587_s2 = inlined_call_operand.hbm [shape: bf16[128,128], index: 2, kind: input, shape index: {}]   ;;  %s588_s3 = inlined_call_operand.vmem [shape: f32[1,128], index: 3, kind: input, shape index: {}]   ;;  %s589_s4 = inlined_call_operand.vmem [shape: f32[1,128], index: 4, kind: input, shape index: {}]   ;;  %s590_s5 = inlined_call_operand.vmem [shape: f32[1,128], index: 5, kind: input, shape index: {}]   ;;  %s591_s6 = inlined_call_operand.hbm [shape: f32[8,128], index: 6, kind: output, shape index: {}]  }
   0x1   :  { %12 = vsyncpa [#allocation8], 0 }
   0x2   :  { %13 = vsyncpa [#allocation6], 0  ;;  %s495_s21 = smov [#allocation4]   ;;  %s423_s25 = scalar_lea.hbm %s586_s1, 1024 }
   0x3   :  { %s21_s22 = sshll.u32 %s495_s21, 4  ;;  %p424_p0 = scmp.ne.s32.totalorder %s586_s1, %s423_s25  ;;  %s22_s22 = int_to_ptr.vmem [resolvable:$true] %s21_s22 }
   0x4   :  { %p427_p1 = scmp.lt.u32.totalorder %s423_s25, %s586_s1 }
   0x6   :  { %p429_p2 = pnand %p427_p1, %p424_p0 }
   0x8   :  { %432 = shalt.err (!%p429_p2)
}
   0x9   :  { %s433_s30 = scalar_lea.vmem %s22_s22, 1024  ;;  %p438_p4 = scmp.lt.s32.totalorder %s22_s22, %s22_s22 }
   0xa   :  { %p434_p3 = scmp.ne.s32.totalorder %s22_s22, %s433_s30  ;;  %p439_p5 = scmp.lt.s32.totalorder %s433_s30, %s433_s30 }
   0xc   :  { %p440_p6 = por %p439_p5, %p438_p4 }
   0xe   :  { %p441_p7 = pnand %p440_p6, %p434_p3 }
  0x10   :  { %444 = shalt.err (!%p441_p7)
}
  0x11   :  { %s496_s7 = smov 64   ;;  %s497_s8 = smov 4  }
  0x12   :  { %27 = dma.hbm_to_vmem [thread:$0]  %s586_s1, 1024, %s22_s22, [#allocation5], %s496_s7, %s496_s7, %s497_s8  }
  0x13   :  { %s498_s11 = smov [#allocation7]   ;;  %s445_s15 = scalar_lea.hbm %s587_s2, 1024 }
  0x14   :  { %s33_s12 = sshll.u32 %s498_s11, 4  ;;  %p446_p8 = scmp.ne.s32.totalorder %s587_s2, %s445_s15  ;;  %s34_s12 = int_to_ptr.vmem [resolvable:$true] %s33_s12 }
  0x15   :  { %p449_p9 = scmp.lt.u32.totalorder %s445_s15, %s587_s2 }
  0x17   :  { %p451_p10 = pnand %p449_p9, %p446_p8 }
  0x19   :  { %454 = shalt.err (!%p451_p10)
}
  0x1a   :  { %s455_s20 = scalar_lea.vmem %s34_s12, 1024  ;;  %p460_p12 = scmp.lt.s32.totalorder %s34_s12, %s34_s12 }
  0x1b   :  { %p456_p11 = scmp.ne.s32.totalorder %s34_s12, %s455_s20  ;;  %p461_p13 = scmp.lt.s32.totalorder %s455_s20, %s455_s20 }
  0x1d   :  { %p462_p0 = por %p461_p13, %p460_p12 }
  0x1f   :  { %p463_p1 = pnand %p462_p0, %p456_p11 }
  0x21   :  { %466 = shalt.err (!%p463_p1)
}
  0x22   :  { %39 = dma.hbm_to_vmem [thread:$0]  %s587_s2, 1024, %s34_s12, [#allocation8], %s496_s7, %s496_s7, %s497_s8  }
  0x23   :  { %489 = dma.done.wait [#allocation5], 1024  }
  0x24   :  { %490 = vsyncadd [#allocation5], 4294966272 }
  0x25   :  { %491 = dma.done.wait [#allocation8], 1024  }
  0x26   :  { %492 = vsyncadd [#allocation8], 4294966272  ;;  %v499_v0 = vmov 0.0   ;;  %vm500_vm0 = vmmov 0   ;;  %v407_v1 = vld [vmem:[#allocation4] sm:$0xff]   ;;  %v409_v3 = vld [vmem:[#allocation4 + $0x8] sm:$0xff]  }
  0x27   :  { %360 = vmatprep.subr.bf16.mxu0 %v499_v0  ;;  %380 = vmatprep.subr.bf16.mxu1 %v499_v0  ;;  %v408_v2 = vld [vmem:[#allocation7] sm:$0xff]   ;;  %v410_v4 = vld [vmem:[#allocation7 + $0x8] sm:$0xff]   ;;  %v411_v5 = vld [vmem:[#allocation4 + $0x10] sm:$0xff]   ;;  %s501_s27 = smov [#allocation9]  }
  0x28   :  { %376 = vmatprep.mubr.msk.bf16.mxu0 %vm500_vm0, %v499_v0  ;;  %396 = vmatprep.mubr.msk.bf16.mxu1 %vm500_vm0, %v499_v0  ;;  %v412_v6 = vld [vmem:[#allocation7 + $0x10] sm:$0xff]   ;;  %v413_v7 = vld [vmem:[#allocation4 + $0x18] sm:$0xff]   ;;  %v415_v9 = vld [vmem:[#allocation4 + $0x20] sm:$0xff]   ;;  %s313_s28 = sshll.u32 %s501_s27, 4  ;;  %s314_s28 = int_to_ptr.vmem [resolvable:$true] %s313_s28 }
  0x29   :  { %361 = vmatpush3.bf16.msra.mxu0 %v407_v1  ;;  %381 = vmatpush3.bf16.msra.mxu1 %v408_v2  ;;  %v414_v8 = vld [vmem:[#allocation7 + $0x18] sm:$0xff]   ;;  %v416_v10 = vld [vmem:[#allocation7 + $0x20] sm:$0xff]   ;;  %v417_v11 = vld [vmem:[#allocation4 + $0x28] sm:$0xff]   ;;  %p472_p3 = scmp.lt.s32.totalorder %s314_s28, %s314_s28 }
  0x2a   :  { %362 = vmatprep.subr.bf16.mxu0 %v499_v0  ;;  %382 = vmatprep.subr.bf16.mxu1 %v499_v0  ;;  %v418_v12 = vld [vmem:[#allocation7 + $0x28] sm:$0xff]   ;;  %v419_v13 = vld [vmem:[#allocation4 + $0x30] sm:$0xff]   ;;  %v59_v15 = vld [vmem:[%s585_s0] sm:$0xff] }
  0x2b   :  { %v420_v14 = vld [vmem:[#allocation7 + $0x30] sm:$0xff]   ;;  %v323_v16 = vld [vmem:[%s588_s3] ss:$0 sm:$0xff]  ;;  %v60_v20 = vpack.c.bf16 %v59_v15, %v59_v15 }
  0x2c   :  { %v421_v17 = vld [vmem:[#allocation4 + $0x38] sm:$0xff]   ;;  %v68_v18 = vmul.f32 %v323_v16, %v59_v15 }
  0x2d   :  { %363 = vmatpush3.bf16.msra.mxu0 %v409_v3  ;;  %383 = vmatpush3.bf16.msra.mxu1 %v410_v4  ;;  %v422_v19 = vld [vmem:[#allocation7 + $0x38] sm:$0xff]  }
  0x2e   :  { %364 = vmatprep.subr.bf16.mxu0 %v499_v0  ;;  %384 = vmatprep.subr.bf16.mxu1 %v499_v0  ;;  %v69_v21 = vpack.c.bf16 %v68_v18, %v68_v18  ;;  %v340_v22 = vld [vmem:[%s589_s4] ss:$0 sm:$0xff]  ;;  %s467_s4 = scalar_lea.vmem %s314_s28, 128 }
  0x2f   :  { %v341_v31 = vld [vmem:[%s590_s5] ss:$0 sm:$0xff]  ;;  %p468_p2 = scmp.ne.s32.totalorder %s314_s28, %s467_s4  ;;  %p473_p4 = scmp.lt.s32.totalorder %s467_s4, %s467_s4 }
  0x31   :  { %365 = vmatpush3.bf16.msra.mxu0 %v411_v5  ;;  %385 = vmatpush3.bf16.msra.mxu1 %v412_v6  ;;  %p474_p5 = por %p473_p4, %p472_p3 }
  0x32   :  { %366 = vmatprep.subr.bf16.mxu0 %v499_v0  ;;  %386 = vmatprep.subr.bf16.mxu1 %v499_v0 }
  0x33   :  { %p475_p6 = pnand %p474_p5, %p468_p2 }
  0x35   :  { %367 = vmatpush3.bf16.msra.mxu0 %v413_v7  ;;  %387 = vmatpush3.bf16.msra.mxu1 %v414_v8 }
  0x36   :  { %368 = vmatprep.subr.bf16.mxu0 %v499_v0  ;;  %388 = vmatprep.subr.bf16.mxu1 %v499_v0 }
  0x39   :  { %369 = vmatpush3.bf16.msra.mxu0 %v415_v9  ;;  %389 = vmatpush3.bf16.msra.mxu1 %v416_v10 }
  0x3a   :  { %370 = vmatprep.subr.bf16.mxu0 %v499_v0  ;;  %390 = vmatprep.subr.bf16.mxu1 %v499_v0 }
  0x3d   :  { %371 = vmatpush3.bf16.msra.mxu0 %v417_v11  ;;  %391 = vmatpush3.bf16.msra.mxu1 %v418_v12 }
  0x3e   :  { %372 = vmatprep.subr.bf16.mxu0 %v499_v0  ;;  %392 = vmatprep.subr.bf16.mxu1 %v499_v0 }
  0x41   :  { %373 = vmatpush3.bf16.msra.mxu0 %v419_v13  ;;  %393 = vmatpush3.bf16.msra.mxu1 %v420_v14 }
  0x42   :  { %374 = vmatprep.subr.bf16.mxu0 %v499_v0  ;;  %394 = vmatprep.subr.bf16.mxu1 %v499_v0 }
  0x45   :  { %375 = vmatpush3.bf16.msra.mxu0 %v421_v17  ;;  %395 = vmatpush3.bf16.msra.mxu1 %v422_v19 }
  0x48   :  { %377 = vmatmul.mubr.bf16.vlgmr.msra.gmra.mrb[0].mxu0 %v60_v20  ;;  %397 = vmatmul.mubr.bf16.vlgmr.msra.gmra.mrb[0].mxu1 %v69_v21 }
 0x11b   :  { %v169_v23 = vpop.f32.mrb[0].mxu0  ;;  %v276_v24 = vpop.f32.mrb[0].mxu1 }
 0x11c   :  { %v378_v25 = vpop.f32.mrb[1].mxu0  ;;  %v296_v26 = vmul.f32 %v340_v22, %v276_v24  ;;  %v398_v27 = vpop.f32.mrb[1].mxu1 }
 0x11d   :  { %v172_v28 = vpop.f32.mrb[2].mxu0  ;;  %v279_v29 = vpop.f32.mrb[2].mxu1 }
 0x11e   :  { %v379_v30 = vpop.f32.mrb[3].mxu0  ;;  %v297_v32 = vadd.f32 %v296_v26, %v169_v23  ;;  %v399_v33 = vpop.f32.mrb[3].mxu1 }
 0x120   :  { %v305_v34 = vadd.f32 %v341_v31, %v297_v32 }
 0x122   :  { %306 = vst [vmem:[#allocation9] sm:$0xff] %v305_v34 }
 0x123   :  { %478 = shalt.err (!%p475_p6)
}
 0x124   :  { %s479_s7 = scalar_lea.hbm %s591_s6, 128 }
 0x125   :  { %p480_p7 = scmp.ne.s32.totalorder %s591_s6, %s479_s7  ;;  %p483_p8 = scmp.lt.u32.totalorder %s479_s7, %s591_s6 }
 0x127   :  { %p485_p9 = pnand %p483_p8, %p480_p7 }
 0x129   :  { %488 = shalt.err (!%p485_p9)
}
 0x12a   :  { %316 = dma.vmem_to_hbm [thread:$0]  %s314_s28, 128, %s591_s6, [#allocation6]  }
 0x12b   :  { %493 = dma.done.wait [#allocation6], 128  }
 0x12c   :  { %494 = vsyncadd [#allocation6], 4294967168 }
 0x12d   :  { %320 = vsyncpa [#allocation5], 1 }
 0x12e   :  { %321 = vsyncpa [#allocation8], 1 }
 0x12f   :  { %322 = vsyncpa [#allocation6], 1 }

</bundles_post_ra>
